<compile_context>
chip_gen: v7x
topology: tpu7x:2x2x1
jax: 0.10.0
libtpu: 0.0.40
codegen_flags: <defaults>
</compile_context>

<pallas_src>
import functools

import jax
import jax.numpy as jnp
from jax.experimental import pallas as pl
from jax.experimental.pallas import tpu as pltpu

_LANES = 128
# im2col map: output position p = oh*2 + ow reads x pixels (oh+kh)*3 + (ow+kw)
_PATCH_IDX = ((0, 1, 3, 4), (1, 2, 4, 5), (3, 4, 6, 7), (4, 5, 7, 8))


def _round_up(a, m):
    return ((a + m - 1) // m) * m


def _cnn_kernel(x_ref, wc_ref, bc_ref, wf_ref, bf_ref, out_ref, *,
                n_out, strip_rows):
    """Fused conv -> relu -> (eval) dropout -> fc, batch on sublanes x lanes.

    x_ref  : (9, TR, 128) VMEM  image pixels, feature-major, batch last
    wc_ref : (n_out*4,)   SMEM  conv weights, wc[c*4 + kh*2 + kw]
    bc_ref : (n_out,)     SMEM  conv bias
    wf_ref : (n_out*4,)   SMEM  fc weights, wf[c*4 + p] (PyTorch flatten order)
    bf_ref : (1,)         SMEM  fc bias
    out_ref: (TR, 128)    VMEM  one scalar per sample (lane-dense store)
    """
    # Hoist every SMEM scalar read above the strip loop (issued once per tile).
    wc = [wc_ref[i] for i in range(n_out * 4)]
    bc = [bc_ref[c] for c in range(n_out)]
    wf = [wf_ref[i] for i in range(n_out * 4)]
    bf = bf_ref[0]

    tile_rows = out_ref.shape[0]
    n_strips = tile_rows // strip_rows

    # Strip-mine over sublane row-strips so the live set stays ~12 vregs
    # instead of block-sized temporaries that spill to VMEM.
    @pl.loop(0, n_strips)
    def _(s):
        r0 = pl.multiple_of(s * strip_rows, strip_rows)
        px = [x_ref[i, pl.ds(r0, strip_rows), :] for i in range(9)]
        acc = jnp.full((strip_rows, _LANES), bf, jnp.float32)  # fc bias folded
        for c in range(n_out):                      # unrolled at trace time
            for p in range(4):
                i0, i1, i2, i3 = _PATCH_IDX[p]
                conv = bc[c] + wc[c * 4 + 0] * px[i0]
                conv = conv + wc[c * 4 + 1] * px[i1]
                conv = conv + wc[c * 4 + 2] * px[i2]
                conv = conv + wc[c * 4 + 3] * px[i3]
                r = jnp.maximum(conv, 0.0)          # ReLU
                acc = acc + wf[c * 4 + p] * r       # fold FC (dropout == id)
        out_ref[pl.ds(r0, strip_rows), :] = acc


@functools.partial(jax.jit, static_argnames=("max_tile_rows", "strip_rows"))
def cnn_forward(x, conv_w, conv_b, fc_w, fc_b, *,
                max_tile_rows=1024, strip_rows=8):
    """x: (B, 3, 3) float32; parameters shaped like the PyTorch module."""
    B = x.shape[0]
    n_out = conv_w.shape[0]

    # ---- tiling: batch-on-lanes layout (row = b // 128, lane = b % 128) ----
    rows = pl.cdiv(B, _LANES)
    if rows >= 2 * strip_rows:
        # keep >=2 grid steps so v7x can shard the "parallel" axis on both TCs
        tile_rows = min(max_tile_rows, _round_up(pl.cdiv(rows, 2), strip_rows))
    else:
        tile_rows = min(max_tile_rows, _round_up(rows, strip_rows))
    tile_rows = max(strip_rows, _round_up(tile_rows, strip_rows))
    rows_pad = pl.cdiv(rows, tile_rows) * tile_rows
    b_pad = rows_pad * _LANES

    # Single fused XLA layout op: (B,3,3) -> (9, rows_pad, 128), batch-minor.
    x_fb = x.reshape(B, 9).astype(jnp.float32).T            # (9, B)
    x_fb = jnp.pad(x_fb, ((0, 0), (0, b_pad - B)))
    x_fb = x_fb.reshape(9, rows_pad, _LANES)

    wc = conv_w.astype(jnp.float32).reshape(n_out * 4)      # wc[c*4 + kh*2 + kw]
    bc = conv_b.astype(jnp.float32).reshape(n_out)
    wf = fc_w.astype(jnp.float32).reshape(n_out * 4)        # wf[c*4 + p]
    bf = fc_b.astype(jnp.float32).reshape(1)

    flops_per_sample = n_out * 4 * (2 * 4 + 1 + 2) + 1      # conv FMAs+relu+fc
    cost = pl.CostEstimate(
        flops=int(b_pad * flops_per_sample),
        transcendentals=0,
        bytes_accessed=int(b_pad * 10 * 4 + (4 * n_out * 4 + n_out + 1) * 4),
    )

    # Double-buffered input block + output block, plus headroom.
    vmem_bytes = 2 * (9 + 1) * tile_rows * _LANES * 4 + (4 << 20)

    out_fb = pl.pallas_call(
        functools.partial(_cnn_kernel, n_out=n_out, strip_rows=strip_rows),
        out_shape=jax.ShapeDtypeStruct((rows_pad, _LANES), jnp.float32),
        grid=(rows_pad // tile_rows,),
        in_specs=[
            pl.BlockSpec((9, tile_rows, _LANES), lambda i: (0, i, 0)),
            pl.BlockSpec(memory_space=pltpu.SMEM),
            pl.BlockSpec(memory_space=pltpu.SMEM),
            pl.BlockSpec(memory_space=pltpu.SMEM),
            pl.BlockSpec(memory_space=pltpu.SMEM),
        ],
        out_specs=pl.BlockSpec((tile_rows, _LANES), lambda i: (i, 0)),
        compiler_params=pltpu.CompilerParams(
            dimension_semantics=("parallel",),
            vmem_limit_bytes=int(vmem_bytes)),
        cost_estimate=cost,
    )(x_fb, wc, bc, wf, bf)

    # sample b sits at (row b // 128, lane b % 128); row-major flatten undoes it
    return out_fb.reshape(b_pad)[:B].reshape(B, 1)


def _reference_forward(x, conv_w, conv_b, fc_w, fc_b):
    """Pure-JAX reference mirroring the PyTorch forward (eval mode)."""
    B = x.shape[0]
    n_out = conv_w.shape[0]
    x4 = x[:, None, :, :]                                   # (B,1,3,3)
    conv = jax.lax.conv_general_dilated(
        x4, conv_w, window_strides=(1, 1), padding="VALID",
        dimension_numbers=("NCHW", "OIHW", "NCHW"))         # (B,n_out,2,2)
    conv = conv + conv_b[None, :, None, None]
    r = jnp.maximum(conv, 0.0)
    flat = r.reshape(B, n_out * 4)                          # c-major flatten
    return flat @ fc_w.T + fc_b                             # (B, 1)


if __name__ == "__main__":
    key = jax.random.PRNGKey(0)
    k_x, k_cw, k_cb, k_fw, k_fb = jax.random.split(key, 5)

    B, n_out = 2, 6
    x = jax.random.normal(k_x, (B, 3, 3), dtype=jnp.float32)

    # Deterministic parameter init (PyTorch-like uniform bounds).
    conv_bound = 1.0 / (1 * 2 * 2) ** 0.5
    fc_bound = 1.0 / (n_out * 2 * 2) ** 0.5
    conv_w = jax.random.uniform(k_cw, (n_out, 1, 2, 2), jnp.float32,
                                -conv_bound, conv_bound)
    conv_b = jax.random.uniform(k_cb, (n_out,), jnp.float32,
                                -conv_bound, conv_bound)
    fc_w = jax.random.uniform(k_fw, (1, n_out * 2 * 2), jnp.float32,
                              -fc_bound, fc_bound)
    fc_b = jax.random.uniform(k_fb, (1,), jnp.float32, -fc_bound, fc_bound)

    out = jax.block_until_ready(cnn_forward(x, conv_w, conv_b, fc_w, fc_b))
    ref = _reference_forward(x, conv_w, conv_b, fc_w, fc_b)
    assert out.shape == (B, 1)
    assert jnp.allclose(out, ref, atol=1e-5, rtol=1e-5)

    # Batch-padding / lane-remainder path.
    B2 = 300
    x2 = jax.random.normal(jax.random.PRNGKey(1), (B2, 3, 3), dtype=jnp.float32)
    out2 = jax.block_until_ready(cnn_forward(x2, conv_w, conv_b, fc_w, fc_b))
    ref2 = _reference_forward(x2, conv_w, conv_b, fc_w, fc_b)
    assert out2.shape == (B2, 1)
    assert jnp.allclose(out2, ref2, atol=1e-5, rtol=1e-5)

    # Multi-grid-step (>=2 tiles) + multi-strip path.
    B3 = 4096
    x3 = jax.random.normal(jax.random.PRNGKey(2), (B3, 3, 3), dtype=jnp.float32)
    out3 = jax.block_until_ready(cnn_forward(x3, conv_w, conv_b, fc_w, fc_b))
    ref3 = _reference_forward(x3, conv_w, conv_b, fc_w, fc_b)
    assert out3.shape == (B3, 1)
    assert jnp.allclose(out3, ref3, atol=1e-5, rtol=1e-5)

    print("KERNEL_OK")
</pallas_src>

<mosaic_0001>
module attributes {stable_mosaic.version = 11 : i64} {
  func.func @_cnn_kernel(%arg0: i32, %arg1: memref<9x8x128xf32, #tpu.memory_space<vmem>>, %arg2: memref<24xf32, #tpu.memory_space<smem>>, %arg3: memref<6xf32, #tpu.memory_space<smem>>, %arg4: memref<24xf32, #tpu.memory_space<smem>>, %arg5: memref<1xf32, #tpu.memory_space<smem>>, %arg6: memref<8x128xf32, #tpu.memory_space<vmem>>) attributes {dimension_semantics = [#tpu.dimension_semantics<parallel>], iteration_bounds = array<i64: 1>, scalar_prefetch = 0 : i64, scratch_operands = 0 : i64, tpu.core_type = #tpu.core_type<tc>, window_params = [{transform_indices = @transform_0, window_bounds = array<i64: 9, 8, 128>}, {transform_indices = @transform_1, window_bounds = array<i64: 24>}, {transform_indices = @transform_2, window_bounds = array<i64: 6>}, {transform_indices = @transform_3, window_bounds = array<i64: 24>}, {transform_indices = @transform_4, window_bounds = array<i64: 1>}, {transform_indices = @transform_5, window_bounds = array<i64: 8, 128>}]} {
    %c0 = arith.constant 0 : index
    %0 = memref.load %arg2[%c0] : memref<24xf32, #tpu.memory_space<smem>>
    %c1 = arith.constant 1 : index
    %1 = memref.load %arg2[%c1] : memref<24xf32, #tpu.memory_space<smem>>
    %c2 = arith.constant 2 : index
    %2 = memref.load %arg2[%c2] : memref<24xf32, #tpu.memory_space<smem>>
    %c3 = arith.constant 3 : index
    %3 = memref.load %arg2[%c3] : memref<24xf32, #tpu.memory_space<smem>>
    %c4 = arith.constant 4 : index
    %4 = memref.load %arg2[%c4] : memref<24xf32, #tpu.memory_space<smem>>
    %c5 = arith.constant 5 : index
    %5 = memref.load %arg2[%c5] : memref<24xf32, #tpu.memory_space<smem>>
    %c6 = arith.constant 6 : index
    %6 = memref.load %arg2[%c6] : memref<24xf32, #tpu.memory_space<smem>>
    %c7 = arith.constant 7 : index
    %7 = memref.load %arg2[%c7] : memref<24xf32, #tpu.memory_space<smem>>
    %c8 = arith.constant 8 : index
    %8 = memref.load %arg2[%c8] : memref<24xf32, #tpu.memory_space<smem>>
    %c9 = arith.constant 9 : index
    %9 = memref.load %arg2[%c9] : memref<24xf32, #tpu.memory_space<smem>>
    %c10 = arith.constant 10 : index
    %10 = memref.load %arg2[%c10] : memref<24xf32, #tpu.memory_space<smem>>
    %c11 = arith.constant 11 : index
    %11 = memref.load %arg2[%c11] : memref<24xf32, #tpu.memory_space<smem>>
    %c12 = arith.constant 12 : index
    %12 = memref.load %arg2[%c12] : memref<24xf32, #tpu.memory_space<smem>>
    %c13 = arith.constant 13 : index
    %13 = memref.load %arg2[%c13] : memref<24xf32, #tpu.memory_space<smem>>
    %c14 = arith.constant 14 : index
    %14 = memref.load %arg2[%c14] : memref<24xf32, #tpu.memory_space<smem>>
    %c15 = arith.constant 15 : index
    %15 = memref.load %arg2[%c15] : memref<24xf32, #tpu.memory_space<smem>>
    %c16 = arith.constant 16 : index
    %16 = memref.load %arg2[%c16] : memref<24xf32, #tpu.memory_space<smem>>
    %c17 = arith.constant 17 : index
    %17 = memref.load %arg2[%c17] : memref<24xf32, #tpu.memory_space<smem>>
    %c18 = arith.constant 18 : index
    %18 = memref.load %arg2[%c18] : memref<24xf32, #tpu.memory_space<smem>>
    %c19 = arith.constant 19 : index
    %19 = memref.load %arg2[%c19] : memref<24xf32, #tpu.memory_space<smem>>
    %c20 = arith.constant 20 : index
    %20 = memref.load %arg2[%c20] : memref<24xf32, #tpu.memory_space<smem>>
    %c21 = arith.constant 21 : index
    %21 = memref.load %arg2[%c21] : memref<24xf32, #tpu.memory_space<smem>>
    %c22 = arith.constant 22 : index
    %22 = memref.load %arg2[%c22] : memref<24xf32, #tpu.memory_space<smem>>
    %c23 = arith.constant 23 : index
    %23 = memref.load %arg2[%c23] : memref<24xf32, #tpu.memory_space<smem>>
    %c0_0 = arith.constant 0 : index
    %24 = memref.load %arg3[%c0_0] : memref<6xf32, #tpu.memory_space<smem>>
    %c1_1 = arith.constant 1 : index
    %25 = memref.load %arg3[%c1_1] : memref<6xf32, #tpu.memory_space<smem>>
    %c2_2 = arith.constant 2 : index
    %26 = memref.load %arg3[%c2_2] : memref<6xf32, #tpu.memory_space<smem>>
    %c3_3 = arith.constant 3 : index
    %27 = memref.load %arg3[%c3_3] : memref<6xf32, #tpu.memory_space<smem>>
    %c4_4 = arith.constant 4 : index
    %28 = memref.load %arg3[%c4_4] : memref<6xf32, #tpu.memory_space<smem>>
    %c5_5 = arith.constant 5 : index
    %29 = memref.load %arg3[%c5_5] : memref<6xf32, #tpu.memory_space<smem>>
    %c0_6 = arith.constant 0 : index
    %30 = memref.load %arg4[%c0_6] : memref<24xf32, #tpu.memory_space<smem>>
    %c1_7 = arith.constant 1 : index
    %31 = memref.load %arg4[%c1_7] : memref<24xf32, #tpu.memory_space<smem>>
    %c2_8 = arith.constant 2 : index
    %32 = memref.load %arg4[%c2_8] : memref<24xf32, #tpu.memory_space<smem>>
    %c3_9 = arith.constant 3 : index
    %33 = memref.load %arg4[%c3_9] : memref<24xf32, #tpu.memory_space<smem>>
    %c4_10 = arith.constant 4 : index
    %34 = memref.load %arg4[%c4_10] : memref<24xf32, #tpu.memory_space<smem>>
    %c5_11 = arith.constant 5 : index
    %35 = memref.load %arg4[%c5_11] : memref<24xf32, #tpu.memory_space<smem>>
    %c6_12 = arith.constant 6 : index
    %36 = memref.load %arg4[%c6_12] : memref<24xf32, #tpu.memory_space<smem>>
    %c7_13 = arith.constant 7 : index
    %37 = memref.load %arg4[%c7_13] : memref<24xf32, #tpu.memory_space<smem>>
    %c8_14 = arith.constant 8 : index
    %38 = memref.load %arg4[%c8_14] : memref<24xf32, #tpu.memory_space<smem>>
    %c9_15 = arith.constant 9 : index
    %39 = memref.load %arg4[%c9_15] : memref<24xf32, #tpu.memory_space<smem>>
    %c10_16 = arith.constant 10 : index
    %40 = memref.load %arg4[%c10_16] : memref<24xf32, #tpu.memory_space<smem>>
    %c11_17 = arith.constant 11 : index
    %41 = memref.load %arg4[%c11_17] : memref<24xf32, #tpu.memory_space<smem>>
    %c12_18 = arith.constant 12 : index
    %42 = memref.load %arg4[%c12_18] : memref<24xf32, #tpu.memory_space<smem>>
    %c13_19 = arith.constant 13 : index
    %43 = memref.load %arg4[%c13_19] : memref<24xf32, #tpu.memory_space<smem>>
    %c14_20 = arith.constant 14 : index
    %44 = memref.load %arg4[%c14_20] : memref<24xf32, #tpu.memory_space<smem>>
    %c15_21 = arith.constant 15 : index
    %45 = memref.load %arg4[%c15_21] : memref<24xf32, #tpu.memory_space<smem>>
    %c16_22 = arith.constant 16 : index
    %46 = memref.load %arg4[%c16_22] : memref<24xf32, #tpu.memory_space<smem>>
    %c17_23 = arith.constant 17 : index
    %47 = memref.load %arg4[%c17_23] : memref<24xf32, #tpu.memory_space<smem>>
    %c18_24 = arith.constant 18 : index
    %48 = memref.load %arg4[%c18_24] : memref<24xf32, #tpu.memory_space<smem>>
    %c19_25 = arith.constant 19 : index
    %49 = memref.load %arg4[%c19_25] : memref<24xf32, #tpu.memory_space<smem>>
    %c20_26 = arith.constant 20 : index
    %50 = memref.load %arg4[%c20_26] : memref<24xf32, #tpu.memory_space<smem>>
    %c21_27 = arith.constant 21 : index
    %51 = memref.load %arg4[%c21_27] : memref<24xf32, #tpu.memory_space<smem>>
    %c22_28 = arith.constant 22 : index
    %52 = memref.load %arg4[%c22_28] : memref<24xf32, #tpu.memory_space<smem>>
    %c23_29 = arith.constant 23 : index
    %53 = memref.load %arg4[%c23_29] : memref<24xf32, #tpu.memory_space<smem>>
    %c0_30 = arith.constant 0 : index
    %54 = memref.load %arg5[%c0_30] : memref<1xf32, #tpu.memory_space<smem>>
    %c0_i32 = arith.constant 0 : i32
    %c1_i32 = arith.constant 1 : i32
    %55 = arith.muli %c0_i32, %c1_i32 : i32
    %c0_i32_31 = arith.constant 0 : i32
    %56 = arith.addi %c0_i32_31, %55 : i32
    %c8_i32 = arith.constant 8 : i32
    %57 = arith.muli %56, %c8_i32 : i32
    %58 = tpu.assume_multiple %57, 8 : i32
    %c0_32 = arith.constant 0 : index
    %59 = arith.index_cast %58 : i32 to index
    %c0_33 = arith.constant 0 : index
    %60 = vector.load %arg1[%c0_32, %59, %c0_33] : memref<9x8x128xf32, #tpu.memory_space<vmem>>, vector<1x8x128xf32>
    %61 = vector.shape_cast %60 : vector<1x8x128xf32> to vector<8x128xf32>
    %c1_34 = arith.constant 1 : index
    %62 = arith.index_cast %58 : i32 to index
    %c0_35 = arith.constant 0 : index
    %63 = vector.load %arg1[%c1_34, %62, %c0_35] : memref<9x8x128xf32, #tpu.memory_space<vmem>>, vector<1x8x128xf32>
    %64 = vector.shape_cast %63 : vector<1x8x128xf32> to vector<8x128xf32>
    %c2_36 = arith.constant 2 : index
    %65 = arith.index_cast %58 : i32 to index
    %c0_37 = arith.constant 0 : index
    %66 = vector.load %arg1[%c2_36, %65, %c0_37] : memref<9x8x128xf32, #tpu.memory_space<vmem>>, vector<1x8x128xf32>
    %67 = vector.shape_cast %66 : vector<1x8x128xf32> to vector<8x128xf32>
    %c3_38 = arith.constant 3 : index
    %68 = arith.index_cast %58 : i32 to index
    %c0_39 = arith.constant 0 : index
    %69 = vector.load %arg1[%c3_38, %68, %c0_39] : memref<9x8x128xf32, #tpu.memory_space<vmem>>, vector<1x8x128xf32>
    %70 = vector.shape_cast %69 : vector<1x8x128xf32> to vector<8x128xf32>
    %c4_40 = arith.constant 4 : index
    %71 = arith.index_cast %58 : i32 to index
    %c0_41 = arith.constant 0 : index
    %72 = vector.load %arg1[%c4_40, %71, %c0_41] : memref<9x8x128xf32, #tpu.memory_space<vmem>>, vector<1x8x128xf32>
    %73 = vector.shape_cast %72 : vector<1x8x128xf32> to vector<8x128xf32>
    %c5_42 = arith.constant 5 : index
    %74 = arith.index_cast %58 : i32 to index
    %c0_43 = arith.constant 0 : index
    %75 = vector.load %arg1[%c5_42, %74, %c0_43] : memref<9x8x128xf32, #tpu.memory_space<vmem>>, vector<1x8x128xf32>
    %76 = vector.shape_cast %75 : vector<1x8x128xf32> to vector<8x128xf32>
    %c6_44 = arith.constant 6 : index
    %77 = arith.index_cast %58 : i32 to index
    %c0_45 = arith.constant 0 : index
    %78 = vector.load %arg1[%c6_44, %77, %c0_45] : memref<9x8x128xf32, #tpu.memory_space<vmem>>, vector<1x8x128xf32>
    %79 = vector.shape_cast %78 : vector<1x8x128xf32> to vector<8x128xf32>
    %c7_46 = arith.constant 7 : index
    %80 = arith.index_cast %58 : i32 to index
    %c0_47 = arith.constant 0 : index
    %81 = vector.load %arg1[%c7_46, %80, %c0_47] : memref<9x8x128xf32, #tpu.memory_space<vmem>>, vector<1x8x128xf32>
    %82 = vector.shape_cast %81 : vector<1x8x128xf32> to vector<8x128xf32>
    %c8_48 = arith.constant 8 : index
    %83 = arith.index_cast %58 : i32 to index
    %c0_49 = arith.constant 0 : index
    %84 = vector.load %arg1[%c8_48, %83, %c0_49] : memref<9x8x128xf32, #tpu.memory_space<vmem>>, vector<1x8x128xf32>
    %85 = vector.shape_cast %84 : vector<1x8x128xf32> to vector<8x128xf32>
    %86 = vector.broadcast %54 : f32 to vector<8x128xf32>
    %87 = vector.broadcast %0 : f32 to vector<8x128xf32>
    %88 = arith.mulf %87, %61 : vector<8x128xf32>
    %89 = vector.broadcast %24 : f32 to vector<8x128xf32>
    %90 = arith.addf %89, %88 : vector<8x128xf32>
    %91 = vector.broadcast %1 : f32 to vector<8x128xf32>
    %92 = arith.mulf %91, %64 : vector<8x128xf32>
    %93 = arith.addf %90, %92 : vector<8x128xf32>
    %94 = vector.broadcast %2 : f32 to vector<8x128xf32>
    %95 = arith.mulf %94, %70 : vector<8x128xf32>
    %96 = arith.addf %93, %95 : vector<8x128xf32>
    %97 = vector.broadcast %3 : f32 to vector<8x128xf32>
    %98 = arith.mulf %97, %73 : vector<8x128xf32>
    %99 = arith.addf %96, %98 : vector<8x128xf32>
    %cst = arith.constant 0.000000e+00 : f32
    %100 = vector.broadcast %cst : f32 to vector<8x128xf32>
    %101 = arith.maximumf %99, %100 : vector<8x128xf32>
    %102 = vector.broadcast %30 : f32 to vector<8x128xf32>
    %103 = arith.mulf %102, %101 : vector<8x128xf32>
    %104 = arith.addf %86, %103 : vector<8x128xf32>
    %105 = vector.broadcast %0 : f32 to vector<8x128xf32>
    %106 = arith.mulf %105, %64 : vector<8x128xf32>
    %107 = vector.broadcast %24 : f32 to vector<8x128xf32>
    %108 = arith.addf %107, %106 : vector<8x128xf32>
    %109 = vector.broadcast %1 : f32 to vector<8x128xf32>
    %110 = arith.mulf %109, %67 : vector<8x128xf32>
    %111 = arith.addf %108, %110 : vector<8x128xf32>
    %112 = vector.broadcast %2 : f32 to vector<8x128xf32>
    %113 = arith.mulf %112, %73 : vector<8x128xf32>
    %114 = arith.addf %111, %113 : vector<8x128xf32>
    %115 = vector.broadcast %3 : f32 to vector<8x128xf32>
    %116 = arith.mulf %115, %76 : vector<8x128xf32>
    %117 = arith.addf %114, %116 : vector<8x128xf32>
    %cst_50 = arith.constant 0.000000e+00 : f32
    %118 = vector.broadcast %cst_50 : f32 to vector<8x128xf32>
    %119 = arith.maximumf %117, %118 : vector<8x128xf32>
    %120 = vector.broadcast %31 : f32 to vector<8x128xf32>
    %121 = arith.mulf %120, %119 : vector<8x128xf32>
    %122 = arith.addf %104, %121 : vector<8x128xf32>
    %123 = vector.broadcast %0 : f32 to vector<8x128xf32>
    %124 = arith.mulf %123, %70 : vector<8x128xf32>
    %125 = vector.broadcast %24 : f32 to vector<8x128xf32>
    %126 = arith.addf %125, %124 : vector<8x128xf32>
    %127 = vector.broadcast %1 : f32 to vector<8x128xf32>
    %128 = arith.mulf %127, %73 : vector<8x128xf32>
    %129 = arith.addf %126, %128 : vector<8x128xf32>
    %130 = vector.broadcast %2 : f32 to vector<8x128xf32>
    %131 = arith.mulf %130, %79 : vector<8x128xf32>
    %132 = arith.addf %129, %131 : vector<8x128xf32>
    %133 = vector.broadcast %3 : f32 to vector<8x128xf32>
    %134 = arith.mulf %133, %82 : vector<8x128xf32>
    %135 = arith.addf %132, %134 : vector<8x128xf32>
    %cst_51 = arith.constant 0.000000e+00 : f32
    %136 = vector.broadcast %cst_51 : f32 to vector<8x128xf32>
    %137 = arith.maximumf %135, %136 : vector<8x128xf32>
    %138 = vector.broadcast %32 : f32 to vector<8x128xf32>
    %139 = arith.mulf %138, %137 : vector<8x128xf32>
    %140 = arith.addf %122, %139 : vector<8x128xf32>
    %141 = vector.broadcast %0 : f32 to vector<8x128xf32>
    %142 = arith.mulf %141, %73 : vector<8x128xf32>
    %143 = vector.broadcast %24 : f32 to vector<8x128xf32>
    %144 = arith.addf %143, %142 : vector<8x128xf32>
    %145 = vector.broadcast %1 : f32 to vector<8x128xf32>
    %146 = arith.mulf %145, %76 : vector<8x128xf32>
    %147 = arith.addf %144, %146 : vector<8x128xf32>
    %148 = vector.broadcast %2 : f32 to vector<8x128xf32>
    %149 = arith.mulf %148, %82 : vector<8x128xf32>
    %150 = arith.addf %147, %149 : vector<8x128xf32>
    %151 = vector.broadcast %3 : f32 to vector<8x128xf32>
    %152 = arith.mulf %151, %85 : vector<8x128xf32>
    %153 = arith.addf %150, %152 : vector<8x128xf32>
    %cst_52 = arith.constant 0.000000e+00 : f32
    %154 = vector.broadcast %cst_52 : f32 to vector<8x128xf32>
    %155 = arith.maximumf %153, %154 : vector<8x128xf32>
    %156 = vector.broadcast %33 : f32 to vector<8x128xf32>
    %157 = arith.mulf %156, %155 : vector<8x128xf32>
    %158 = arith.addf %140, %157 : vector<8x128xf32>
    %159 = vector.broadcast %4 : f32 to vector<8x128xf32>
    %160 = arith.mulf %159, %61 : vector<8x128xf32>
    %161 = vector.broadcast %25 : f32 to vector<8x128xf32>
    %162 = arith.addf %161, %160 : vector<8x128xf32>
    %163 = vector.broadcast %5 : f32 to vector<8x128xf32>
    %164 = arith.mulf %163, %64 : vector<8x128xf32>
    %165 = arith.addf %162, %164 : vector<8x128xf32>
    %166 = vector.broadcast %6 : f32 to vector<8x128xf32>
    %167 = arith.mulf %166, %70 : vector<8x128xf32>
    %168 = arith.addf %165, %167 : vector<8x128xf32>
    %169 = vector.broadcast %7 : f32 to vector<8x128xf32>
    %170 = arith.mulf %169, %73 : vector<8x128xf32>
    %171 = arith.addf %168, %170 : vector<8x128xf32>
    %cst_53 = arith.constant 0.000000e+00 : f32
    %172 = vector.broadcast %cst_53 : f32 to vector<8x128xf32>
    %173 = arith.maximumf %171, %172 : vector<8x128xf32>
    %174 = vector.broadcast %34 : f32 to vector<8x128xf32>
    %175 = arith.mulf %174, %173 : vector<8x128xf32>
    %176 = arith.addf %158, %175 : vector<8x128xf32>
    %177 = vector.broadcast %4 : f32 to vector<8x128xf32>
    %178 = arith.mulf %177, %64 : vector<8x128xf32>
    %179 = vector.broadcast %25 : f32 to vector<8x128xf32>
    %180 = arith.addf %179, %178 : vector<8x128xf32>
    %181 = vector.broadcast %5 : f32 to vector<8x128xf32>
    %182 = arith.mulf %181, %67 : vector<8x128xf32>
    %183 = arith.addf %180, %182 : vector<8x128xf32>
    %184 = vector.broadcast %6 : f32 to vector<8x128xf32>
    %185 = arith.mulf %184, %73 : vector<8x128xf32>
    %186 = arith.addf %183, %185 : vector<8x128xf32>
    %187 = vector.broadcast %7 : f32 to vector<8x128xf32>
    %188 = arith.mulf %187, %76 : vector<8x128xf32>
    %189 = arith.addf %186, %188 : vector<8x128xf32>
    %cst_54 = arith.constant 0.000000e+00 : f32
    %190 = vector.broadcast %cst_54 : f32 to vector<8x128xf32>
    %191 = arith.maximumf %189, %190 : vector<8x128xf32>
    %192 = vector.broadcast %35 : f32 to vector<8x128xf32>
    %193 = arith.mulf %192, %191 : vector<8x128xf32>
    %194 = arith.addf %176, %193 : vector<8x128xf32>
    %195 = vector.broadcast %4 : f32 to vector<8x128xf32>
    %196 = arith.mulf %195, %70 : vector<8x128xf32>
    %197 = vector.broadcast %25 : f32 to vector<8x128xf32>
    %198 = arith.addf %197, %196 : vector<8x128xf32>
    %199 = vector.broadcast %5 : f32 to vector<8x128xf32>
    %200 = arith.mulf %199, %73 : vector<8x128xf32>
    %201 = arith.addf %198, %200 : vector<8x128xf32>
    %202 = vector.broadcast %6 : f32 to vector<8x128xf32>
    %203 = arith.mulf %202, %79 : vector<8x128xf32>
    %204 = arith.addf %201, %203 : vector<8x128xf32>
    %205 = vector.broadcast %7 : f32 to vector<8x128xf32>
    %206 = arith.mulf %205, %82 : vector<8x128xf32>
    %207 = arith.addf %204, %206 : vector<8x128xf32>
    %cst_55 = arith.constant 0.000000e+00 : f32
    %208 = vector.broadcast %cst_55 : f32 to vector<8x128xf32>
    %209 = arith.maximumf %207, %208 : vector<8x128xf32>
    %210 = vector.broadcast %36 : f32 to vector<8x128xf32>
    %211 = arith.mulf %210, %209 : vector<8x128xf32>
    %212 = arith.addf %194, %211 : vector<8x128xf32>
    %213 = vector.broadcast %4 : f32 to vector<8x128xf32>
    %214 = arith.mulf %213, %73 : vector<8x128xf32>
    %215 = vector.broadcast %25 : f32 to vector<8x128xf32>
    %216 = arith.addf %215, %214 : vector<8x128xf32>
    %217 = vector.broadcast %5 : f32 to vector<8x128xf32>
    %218 = arith.mulf %217, %76 : vector<8x128xf32>
    %219 = arith.addf %216, %218 : vector<8x128xf32>
    %220 = vector.broadcast %6 : f32 to vector<8x128xf32>
    %221 = arith.mulf %220, %82 : vector<8x128xf32>
    %222 = arith.addf %219, %221 : vector<8x128xf32>
    %223 = vector.broadcast %7 : f32 to vector<8x128xf32>
    %224 = arith.mulf %223, %85 : vector<8x128xf32>
    %225 = arith.addf %222, %224 : vector<8x128xf32>
    %cst_56 = arith.constant 0.000000e+00 : f32
    %226 = vector.broadcast %cst_56 : f32 to vector<8x128xf32>
    %227 = arith.maximumf %225, %226 : vector<8x128xf32>
    %228 = vector.broadcast %37 : f32 to vector<8x128xf32>
    %229 = arith.mulf %228, %227 : vector<8x128xf32>
    %230 = arith.addf %212, %229 : vector<8x128xf32>
    %231 = vector.broadcast %8 : f32 to vector<8x128xf32>
    %232 = arith.mulf %231, %61 : vector<8x128xf32>
    %233 = vector.broadcast %26 : f32 to vector<8x128xf32>
    %234 = arith.addf %233, %232 : vector<8x128xf32>
    %235 = vector.broadcast %9 : f32 to vector<8x128xf32>
    %236 = arith.mulf %235, %64 : vector<8x128xf32>
    %237 = arith.addf %234, %236 : vector<8x128xf32>
    %238 = vector.broadcast %10 : f32 to vector<8x128xf32>
    %239 = arith.mulf %238, %70 : vector<8x128xf32>
    %240 = arith.addf %237, %239 : vector<8x128xf32>
    %241 = vector.broadcast %11 : f32 to vector<8x128xf32>
    %242 = arith.mulf %241, %73 : vector<8x128xf32>
    %243 = arith.addf %240, %242 : vector<8x128xf32>
    %cst_57 = arith.constant 0.000000e+00 : f32
    %244 = vector.broadcast %cst_57 : f32 to vector<8x128xf32>
    %245 = arith.maximumf %243, %244 : vector<8x128xf32>
    %246 = vector.broadcast %38 : f32 to vector<8x128xf32>
    %247 = arith.mulf %246, %245 : vector<8x128xf32>
    %248 = arith.addf %230, %247 : vector<8x128xf32>
    %249 = vector.broadcast %8 : f32 to vector<8x128xf32>
    %250 = arith.mulf %249, %64 : vector<8x128xf32>
    %251 = vector.broadcast %26 : f32 to vector<8x128xf32>
    %252 = arith.addf %251, %250 : vector<8x128xf32>
    %253 = vector.broadcast %9 : f32 to vector<8x128xf32>
    %254 = arith.mulf %253, %67 : vector<8x128xf32>
    %255 = arith.addf %252, %254 : vector<8x128xf32>
    %256 = vector.broadcast %10 : f32 to vector<8x128xf32>
    %257 = arith.mulf %256, %73 : vector<8x128xf32>
    %258 = arith.addf %255, %257 : vector<8x128xf32>
    %259 = vector.broadcast %11 : f32 to vector<8x128xf32>
    %260 = arith.mulf %259, %76 : vector<8x128xf32>
    %261 = arith.addf %258, %260 : vector<8x128xf32>
    %cst_58 = arith.constant 0.000000e+00 : f32
    %262 = vector.broadcast %cst_58 : f32 to vector<8x128xf32>
    %263 = arith.maximumf %261, %262 : vector<8x128xf32>
    %264 = vector.broadcast %39 : f32 to vector<8x128xf32>
    %265 = arith.mulf %264, %263 : vector<8x128xf32>
    %266 = arith.addf %248, %265 : vector<8x128xf32>
    %267 = vector.broadcast %8 : f32 to vector<8x128xf32>
    %268 = arith.mulf %267, %70 : vector<8x128xf32>
    %269 = vector.broadcast %26 : f32 to vector<8x128xf32>
    %270 = arith.addf %269, %268 : vector<8x128xf32>
    %271 = vector.broadcast %9 : f32 to vector<8x128xf32>
    %272 = arith.mulf %271, %73 : vector<8x128xf32>
    %273 = arith.addf %270, %272 : vector<8x128xf32>
    %274 = vector.broadcast %10 : f32 to vector<8x128xf32>
    %275 = arith.mulf %274, %79 : vector<8x128xf32>
    %276 = arith.addf %273, %275 : vector<8x128xf32>
    %277 = vector.broadcast %11 : f32 to vector<8x128xf32>
    %278 = arith.mulf %277, %82 : vector<8x128xf32>
    %279 = arith.addf %276, %278 : vector<8x128xf32>
    %cst_59 = arith.constant 0.000000e+00 : f32
    %280 = vector.broadcast %cst_59 : f32 to vector<8x128xf32>
    %281 = arith.maximumf %279, %280 : vector<8x128xf32>
    %282 = vector.broadcast %40 : f32 to vector<8x128xf32>
    %283 = arith.mulf %282, %281 : vector<8x128xf32>
    %284 = arith.addf %266, %283 : vector<8x128xf32>
    %285 = vector.broadcast %8 : f32 to vector<8x128xf32>
    %286 = arith.mulf %285, %73 : vector<8x128xf32>
    %287 = vector.broadcast %26 : f32 to vector<8x128xf32>
    %288 = arith.addf %287, %286 : vector<8x128xf32>
    %289 = vector.broadcast %9 : f32 to vector<8x128xf32>
    %290 = arith.mulf %289, %76 : vector<8x128xf32>
    %291 = arith.addf %288, %290 : vector<8x128xf32>
    %292 = vector.broadcast %10 : f32 to vector<8x128xf32>
    %293 = arith.mulf %292, %82 : vector<8x128xf32>
    %294 = arith.addf %291, %293 : vector<8x128xf32>
    %295 = vector.broadcast %11 : f32 to vector<8x128xf32>
    %296 = arith.mulf %295, %85 : vector<8x128xf32>
    %297 = arith.addf %294, %296 : vector<8x128xf32>
    %cst_60 = arith.constant 0.000000e+00 : f32
    %298 = vector.broadcast %cst_60 : f32 to vector<8x128xf32>
    %299 = arith.maximumf %297, %298 : vector<8x128xf32>
    %300 = vector.broadcast %41 : f32 to vector<8x128xf32>
    %301 = arith.mulf %300, %299 : vector<8x128xf32>
    %302 = arith.addf %284, %301 : vector<8x128xf32>
    %303 = vector.broadcast %12 : f32 to vector<8x128xf32>
    %304 = arith.mulf %303, %61 : vector<8x128xf32>
    %305 = vector.broadcast %27 : f32 to vector<8x128xf32>
    %306 = arith.addf %305, %304 : vector<8x128xf32>
    %307 = vector.broadcast %13 : f32 to vector<8x128xf32>
    %308 = arith.mulf %307, %64 : vector<8x128xf32>
    %309 = arith.addf %306, %308 : vector<8x128xf32>
    %310 = vector.broadcast %14 : f32 to vector<8x128xf32>
    %311 = arith.mulf %310, %70 : vector<8x128xf32>
    %312 = arith.addf %309, %311 : vector<8x128xf32>
    %313 = vector.broadcast %15 : f32 to vector<8x128xf32>
    %314 = arith.mulf %313, %73 : vector<8x128xf32>
    %315 = arith.addf %312, %314 : vector<8x128xf32>
    %cst_61 = arith.constant 0.000000e+00 : f32
    %316 = vector.broadcast %cst_61 : f32 to vector<8x128xf32>
    %317 = arith.maximumf %315, %316 : vector<8x128xf32>
    %318 = vector.broadcast %42 : f32 to vector<8x128xf32>
    %319 = arith.mulf %318, %317 : vector<8x128xf32>
    %320 = arith.addf %302, %319 : vector<8x128xf32>
    %321 = vector.broadcast %12 : f32 to vector<8x128xf32>
    %322 = arith.mulf %321, %64 : vector<8x128xf32>
    %323 = vector.broadcast %27 : f32 to vector<8x128xf32>
    %324 = arith.addf %323, %322 : vector<8x128xf32>
    %325 = vector.broadcast %13 : f32 to vector<8x128xf32>
    %326 = arith.mulf %325, %67 : vector<8x128xf32>
    %327 = arith.addf %324, %326 : vector<8x128xf32>
    %328 = vector.broadcast %14 : f32 to vector<8x128xf32>
    %329 = arith.mulf %328, %73 : vector<8x128xf32>
    %330 = arith.addf %327, %329 : vector<8x128xf32>
    %331 = vector.broadcast %15 : f32 to vector<8x128xf32>
    %332 = arith.mulf %331, %76 : vector<8x128xf32>
    %333 = arith.addf %330, %332 : vector<8x128xf32>
    %cst_62 = arith.constant 0.000000e+00 : f32
    %334 = vector.broadcast %cst_62 : f32 to vector<8x128xf32>
    %335 = arith.maximumf %333, %334 : vector<8x128xf32>
    %336 = vector.broadcast %43 : f32 to vector<8x128xf32>
    %337 = arith.mulf %336, %335 : vector<8x128xf32>
    %338 = arith.addf %320, %337 : vector<8x128xf32>
    %339 = vector.broadcast %12 : f32 to vector<8x128xf32>
    %340 = arith.mulf %339, %70 : vector<8x128xf32>
    %341 = vector.broadcast %27 : f32 to vector<8x128xf32>
    %342 = arith.addf %341, %340 : vector<8x128xf32>
    %343 = vector.broadcast %13 : f32 to vector<8x128xf32>
    %344 = arith.mulf %343, %73 : vector<8x128xf32>
    %345 = arith.addf %342, %344 : vector<8x128xf32>
    %346 = vector.broadcast %14 : f32 to vector<8x128xf32>
    %347 = arith.mulf %346, %79 : vector<8x128xf32>
    %348 = arith.addf %345, %347 : vector<8x128xf32>
    %349 = vector.broadcast %15 : f32 to vector<8x128xf32>
    %350 = arith.mulf %349, %82 : vector<8x128xf32>
    %351 = arith.addf %348, %350 : vector<8x128xf32>
    %cst_63 = arith.constant 0.000000e+00 : f32
    %352 = vector.broadcast %cst_63 : f32 to vector<8x128xf32>
    %353 = arith.maximumf %351, %352 : vector<8x128xf32>
    %354 = vector.broadcast %44 : f32 to vector<8x128xf32>
    %355 = arith.mulf %354, %353 : vector<8x128xf32>
    %356 = arith.addf %338, %355 : vector<8x128xf32>
    %357 = vector.broadcast %12 : f32 to vector<8x128xf32>
    %358 = arith.mulf %357, %73 : vector<8x128xf32>
    %359 = vector.broadcast %27 : f32 to vector<8x128xf32>
    %360 = arith.addf %359, %358 : vector<8x128xf32>
    %361 = vector.broadcast %13 : f32 to vector<8x128xf32>
    %362 = arith.mulf %361, %76 : vector<8x128xf32>
    %363 = arith.addf %360, %362 : vector<8x128xf32>
    %364 = vector.broadcast %14 : f32 to vector<8x128xf32>
    %365 = arith.mulf %364, %82 : vector<8x128xf32>
    %366 = arith.addf %363, %365 : vector<8x128xf32>
    %367 = vector.broadcast %15 : f32 to vector<8x128xf32>
    %368 = arith.mulf %367, %85 : vector<8x128xf32>
    %369 = arith.addf %366, %368 : vector<8x128xf32>
    %cst_64 = arith.constant 0.000000e+00 : f32
    %370 = vector.broadcast %cst_64 : f32 to vector<8x128xf32>
    %371 = arith.maximumf %369, %370 : vector<8x128xf32>
    %372 = vector.broadcast %45 : f32 to vector<8x128xf32>
    %373 = arith.mulf %372, %371 : vector<8x128xf32>
    %374 = arith.addf %356, %373 : vector<8x128xf32>
    %375 = vector.broadcast %16 : f32 to vector<8x128xf32>
    %376 = arith.mulf %375, %61 : vector<8x128xf32>
    %377 = vector.broadcast %28 : f32 to vector<8x128xf32>
    %378 = arith.addf %377, %376 : vector<8x128xf32>
    %379 = vector.broadcast %17 : f32 to vector<8x128xf32>
    %380 = arith.mulf %379, %64 : vector<8x128xf32>
    %381 = arith.addf %378, %380 : vector<8x128xf32>
    %382 = vector.broadcast %18 : f32 to vector<8x128xf32>
    %383 = arith.mulf %382, %70 : vector<8x128xf32>
    %384 = arith.addf %381, %383 : vector<8x128xf32>
    %385 = vector.broadcast %19 : f32 to vector<8x128xf32>
    %386 = arith.mulf %385, %73 : vector<8x128xf32>
    %387 = arith.addf %384, %386 : vector<8x128xf32>
    %cst_65 = arith.constant 0.000000e+00 : f32
    %388 = vector.broadcast %cst_65 : f32 to vector<8x128xf32>
    %389 = arith.maximumf %387, %388 : vector<8x128xf32>
    %390 = vector.broadcast %46 : f32 to vector<8x128xf32>
    %391 = arith.mulf %390, %389 : vector<8x128xf32>
    %392 = arith.addf %374, %391 : vector<8x128xf32>
    %393 = vector.broadcast %16 : f32 to vector<8x128xf32>
    %394 = arith.mulf %393, %64 : vector<8x128xf32>
    %395 = vector.broadcast %28 : f32 to vector<8x128xf32>
    %396 = arith.addf %395, %394 : vector<8x128xf32>
    %397 = vector.broadcast %17 : f32 to vector<8x128xf32>
    %398 = arith.mulf %397, %67 : vector<8x128xf32>
    %399 = arith.addf %396, %398 : vector<8x128xf32>
    %400 = vector.broadcast %18 : f32 to vector<8x128xf32>
    %401 = arith.mulf %400, %73 : vector<8x128xf32>
    %402 = arith.addf %399, %401 : vector<8x128xf32>
    %403 = vector.broadcast %19 : f32 to vector<8x128xf32>
    %404 = arith.mulf %403, %76 : vector<8x128xf32>
    %405 = arith.addf %402, %404 : vector<8x128xf32>
    %cst_66 = arith.constant 0.000000e+00 : f32
    %406 = vector.broadcast %cst_66 : f32 to vector<8x128xf32>
    %407 = arith.maximumf %405, %406 : vector<8x128xf32>
    %408 = vector.broadcast %47 : f32 to vector<8x128xf32>
    %409 = arith.mulf %408, %407 : vector<8x128xf32>
    %410 = arith.addf %392, %409 : vector<8x128xf32>
    %411 = vector.broadcast %16 : f32 to vector<8x128xf32>
    %412 = arith.mulf %411, %70 : vector<8x128xf32>
    %413 = vector.broadcast %28 : f32 to vector<8x128xf32>
    %414 = arith.addf %413, %412 : vector<8x128xf32>
    %415 = vector.broadcast %17 : f32 to vector<8x128xf32>
    %416 = arith.mulf %415, %73 : vector<8x128xf32>
    %417 = arith.addf %414, %416 : vector<8x128xf32>
    %418 = vector.broadcast %18 : f32 to vector<8x128xf32>
    %419 = arith.mulf %418, %79 : vector<8x128xf32>
    %420 = arith.addf %417, %419 : vector<8x128xf32>
    %421 = vector.broadcast %19 : f32 to vector<8x128xf32>
    %422 = arith.mulf %421, %82 : vector<8x128xf32>
    %423 = arith.addf %420, %422 : vector<8x128xf32>
    %cst_67 = arith.constant 0.000000e+00 : f32
    %424 = vector.broadcast %cst_67 : f32 to vector<8x128xf32>
    %425 = arith.maximumf %423, %424 : vector<8x128xf32>
    %426 = vector.broadcast %48 : f32 to vector<8x128xf32>
    %427 = arith.mulf %426, %425 : vector<8x128xf32>
    %428 = arith.addf %410, %427 : vector<8x128xf32>
    %429 = vector.broadcast %16 : f32 to vector<8x128xf32>
    %430 = arith.mulf %429, %73 : vector<8x128xf32>
    %431 = vector.broadcast %28 : f32 to vector<8x128xf32>
    %432 = arith.addf %431, %430 : vector<8x128xf32>
    %433 = vector.broadcast %17 : f32 to vector<8x128xf32>
    %434 = arith.mulf %433, %76 : vector<8x128xf32>
    %435 = arith.addf %432, %434 : vector<8x128xf32>
    %436 = vector.broadcast %18 : f32 to vector<8x128xf32>
    %437 = arith.mulf %436, %82 : vector<8x128xf32>
    %438 = arith.addf %435, %437 : vector<8x128xf32>
    %439 = vector.broadcast %19 : f32 to vector<8x128xf32>
    %440 = arith.mulf %439, %85 : vector<8x128xf32>
    %441 = arith.addf %438, %440 : vector<8x128xf32>
    %cst_68 = arith.constant 0.000000e+00 : f32
    %442 = vector.broadcast %cst_68 : f32 to vector<8x128xf32>
    %443 = arith.maximumf %441, %442 : vector<8x128xf32>
    %444 = vector.broadcast %49 : f32 to vector<8x128xf32>
    %445 = arith.mulf %444, %443 : vector<8x128xf32>
    %446 = arith.addf %428, %445 : vector<8x128xf32>
    %447 = vector.broadcast %20 : f32 to vector<8x128xf32>
    %448 = arith.mulf %447, %61 : vector<8x128xf32>
    %449 = vector.broadcast %29 : f32 to vector<8x128xf32>
    %450 = arith.addf %449, %448 : vector<8x128xf32>
    %451 = vector.broadcast %21 : f32 to vector<8x128xf32>
    %452 = arith.mulf %451, %64 : vector<8x128xf32>
    %453 = arith.addf %450, %452 : vector<8x128xf32>
    %454 = vector.broadcast %22 : f32 to vector<8x128xf32>
    %455 = arith.mulf %454, %70 : vector<8x128xf32>
    %456 = arith.addf %453, %455 : vector<8x128xf32>
    %457 = vector.broadcast %23 : f32 to vector<8x128xf32>
    %458 = arith.mulf %457, %73 : vector<8x128xf32>
    %459 = arith.addf %456, %458 : vector<8x128xf32>
    %cst_69 = arith.constant 0.000000e+00 : f32
    %460 = vector.broadcast %cst_69 : f32 to vector<8x128xf32>
    %461 = arith.maximumf %459, %460 : vector<8x128xf32>
    %462 = vector.broadcast %50 : f32 to vector<8x128xf32>
    %463 = arith.mulf %462, %461 : vector<8x128xf32>
    %464 = arith.addf %446, %463 : vector<8x128xf32>
    %465 = vector.broadcast %20 : f32 to vector<8x128xf32>
    %466 = arith.mulf %465, %64 : vector<8x128xf32>
    %467 = vector.broadcast %29 : f32 to vector<8x128xf32>
    %468 = arith.addf %467, %466 : vector<8x128xf32>
    %469 = vector.broadcast %21 : f32 to vector<8x128xf32>
    %470 = arith.mulf %469, %67 : vector<8x128xf32>
    %471 = arith.addf %468, %470 : vector<8x128xf32>
    %472 = vector.broadcast %22 : f32 to vector<8x128xf32>
    %473 = arith.mulf %472, %73 : vector<8x128xf32>
    %474 = arith.addf %471, %473 : vector<8x128xf32>
    %475 = vector.broadcast %23 : f32 to vector<8x128xf32>
    %476 = arith.mulf %475, %76 : vector<8x128xf32>
    %477 = arith.addf %474, %476 : vector<8x128xf32>
    %cst_70 = arith.constant 0.000000e+00 : f32
    %478 = vector.broadcast %cst_70 : f32 to vector<8x128xf32>
    %479 = arith.maximumf %477, %478 : vector<8x128xf32>
    %480 = vector.broadcast %51 : f32 to vector<8x128xf32>
    %481 = arith.mulf %480, %479 : vector<8x128xf32>
    %482 = arith.addf %464, %481 : vector<8x128xf32>
    %483 = vector.broadcast %20 : f32 to vector<8x128xf32>
    %484 = arith.mulf %483, %70 : vector<8x128xf32>
    %485 = vector.broadcast %29 : f32 to vector<8x128xf32>
    %486 = arith.addf %485, %484 : vector<8x128xf32>
    %487 = vector.broadcast %21 : f32 to vector<8x128xf32>
    %488 = arith.mulf %487, %73 : vector<8x128xf32>
    %489 = arith.addf %486, %488 : vector<8x128xf32>
    %490 = vector.broadcast %22 : f32 to vector<8x128xf32>
    %491 = arith.mulf %490, %79 : vector<8x128xf32>
    %492 = arith.addf %489, %491 : vector<8x128xf32>
    %493 = vector.broadcast %23 : f32 to vector<8x128xf32>
    %494 = arith.mulf %493, %82 : vector<8x128xf32>
    %495 = arith.addf %492, %494 : vector<8x128xf32>
    %cst_71 = arith.constant 0.000000e+00 : f32
    %496 = vector.broadcast %cst_71 : f32 to vector<8x128xf32>
    %497 = arith.maximumf %495, %496 : vector<8x128xf32>
    %498 = vector.broadcast %52 : f32 to vector<8x128xf32>
    %499 = arith.mulf %498, %497 : vector<8x128xf32>
    %500 = arith.addf %482, %499 : vector<8x128xf32>
    %501 = vector.broadcast %20 : f32 to vector<8x128xf32>
    %502 = arith.mulf %501, %73 : vector<8x128xf32>
    %503 = vector.broadcast %29 : f32 to vector<8x128xf32>
    %504 = arith.addf %503, %502 : vector<8x128xf32>
    %505 = vector.broadcast %21 : f32 to vector<8x128xf32>
    %506 = arith.mulf %505, %76 : vector<8x128xf32>
    %507 = arith.addf %504, %506 : vector<8x128xf32>
    %508 = vector.broadcast %22 : f32 to vector<8x128xf32>
    %509 = arith.mulf %508, %82 : vector<8x128xf32>
    %510 = arith.addf %507, %509 : vector<8x128xf32>
    %511 = vector.broadcast %23 : f32 to vector<8x128xf32>
    %512 = arith.mulf %511, %85 : vector<8x128xf32>
    %513 = arith.addf %510, %512 : vector<8x128xf32>
    %cst_72 = arith.constant 0.000000e+00 : f32
    %514 = vector.broadcast %cst_72 : f32 to vector<8x128xf32>
    %515 = arith.maximumf %513, %514 : vector<8x128xf32>
    %516 = vector.broadcast %53 : f32 to vector<8x128xf32>
    %517 = arith.mulf %516, %515 : vector<8x128xf32>
    %518 = arith.addf %500, %517 : vector<8x128xf32>
    %519 = arith.index_cast %58 : i32 to index
    %c0_73 = arith.constant 0 : index
    %520 = vector.load %arg6[%519, %c0_73] : memref<8x128xf32, #tpu.memory_space<vmem>>, vector<8x128xf32>
    tpu.vector_store %arg6[%519, %c0_73], %518 {strides = array<i32>} : memref<8x128xf32, #tpu.memory_space<vmem>>, vector<8x128xf32>,
    %c1_i32_74 = arith.constant 1 : i32
    return
  }
  func.func @transform_0(%arg0: i32) -> (i32, i32, i32) {
    %c0_i32 = arith.constant 0 : i32
    %c0_i32_0 = arith.constant 0 : i32
    %c0_i32_1 = arith.constant 0 : i32
    return %c0_i32, %arg0, %c0_i32_0 : i32, i32, i32
  }
  func.func @transform_1(%arg0: i32) -> i32 {
    %c0_i32 = arith.constant 0 : i32
    %c0_i32_0 = arith.constant 0 : i32
    return %c0_i32 : i32
  }
  func.func @transform_2(%arg0: i32) -> i32 {
    %c0_i32 = arith.constant 0 : i32
    %c0_i32_0 = arith.constant 0 : i32
    return %c0_i32 : i32
  }
  func.func @transform_3(%arg0: i32) -> i32 {
    %c0_i32 = arith.constant 0 : i32
    %c0_i32_0 = arith.constant 0 : i32
    return %c0_i32 : i32
  }
  func.func @transform_4(%arg0: i32) -> i32 {
    %c0_i32 = arith.constant 0 : i32
    %c0_i32_0 = arith.constant 0 : i32
    return %c0_i32 : i32
  }
  func.func @transform_5(%arg0: i32) -> (i32, i32) {
    %c0_i32 = arith.constant 0 : i32
    %c0_i32_0 = arith.constant 0 : i32
    return %arg0, %c0_i32 : i32, i32
  }
}

</mosaic_0001>

<bundles_post_ra>
// kernel: cnn_forward.1
= control target key start
LH: loop header
LB: loop body
LE: loop exit
PB: predicated region body
PF: predicated region fallthrough
CT: control target
= control target key end

     0   :  { %11 = vsyncpa [#allocation4], 0  ;;  %s991_s0 = inlined_call_operand.vmem [shape: f32[9,8,128], index: 0, kind: input, shape index: {}]   ;;  %s992_s1 = inlined_call_operand.vmem [shape: f32[24], index: 1, kind: input, shape index: {}]   ;;  %s993_s2 = inlined_call_operand.vmem [shape: f32[6], index: 2, kind: input, shape index: {}]   ;;  %s994_s3 = inlined_call_operand.vmem [shape: f32[24], index: 3, kind: input, shape index: {}]   ;;  %s995_s4 = inlined_call_operand.<no memory space> [shape: f32[1], index: 4, kind: input, shape index: {}]   ;;  %s996_s5 = inlined_call_operand.vmem [shape: f32[8,128], index: 5, kind: output, shape index: {}]  }
   0x1   :  { %12 = vsyncpa [#allocation6], 0  ;;  %s31_s20 = sshll.u32 %s993_s2, 4  ;;  %s21_s23 = sshll.u32 %s992_s1, 4  ;;  %s32_s20 = int_to_ptr.vmem [resolvable:$true] %s31_s20  ;;  %s22_s23 = int_to_ptr.vmem [resolvable:$true] %s21_s23 }
   0x2   :  { %s533_s24 = scalar_lea.vmem %s32_s20, 16  ;;  %p538_p1 = scmp.lt.s32.totalorder %s32_s20, %s32_s20 }
   0x3   :  { %p534_p0 = scmp.ne.s32.totalorder %s32_s20, %s533_s24  ;;  %p539_p2 = scmp.lt.s32.totalorder %s533_s24, %s533_s24 }
   0x5   :  { %p540_p3 = por %p539_p2, %p538_p1 }
   0x7   :  { %p541_p4 = pnand %p540_p3, %p534_p0 }
   0x9   :  { %544 = shalt.err (!%p541_p4)
}
   0xa   :  { %s573_s25 = smov [#allocation5]   ;;  %s545_s26 = scalar_lea.vmem %s22_s23, 16 }
   0xb   :  { %34 = dma.vmem_to_smem %s32_s20, 16, %s573_s25, [#allocation6]  }
   0xc   :  { %p546_p5 = scmp.ne.s32.totalorder %s22_s23, %s545_s26  ;;  %p550_p6 = scmp.lt.s32.totalorder %s22_s23, %s22_s23 }
   0xd   :  { %p551_p7 = scmp.lt.s32.totalorder %s545_s26, %s545_s26 }
   0xf   :  { %p552_p8 = por %p551_p7, %p550_p6 }
  0x11   :  { %p553_p9 = pnand %p552_p8, %p546_p5 }
  0x13   :  { %556 = shalt.err (!%p553_p9)
}
  0x14   :  { %s574_s2 = smov [#allocation3]   ;;  %s41_s28 = sshll.u32 %s994_s3, 4  ;;  %s42_s28 = int_to_ptr.vmem [resolvable:$true] %s41_s28 }
  0x15   :  { %24 = dma.vmem_to_smem %s22_s23, 16, %s574_s2, [#allocation4]  }
  0x16   :  { %s557_s29 = scalar_lea.vmem %s42_s28, 16  ;;  %p562_p11 = scmp.lt.s32.totalorder %s42_s28, %s42_s28 }
  0x17   :  { %p558_p10 = scmp.ne.s32.totalorder %s42_s28, %s557_s29  ;;  %p563_p12 = scmp.lt.s32.totalorder %s557_s29, %s557_s29 }
  0x19   :  { %p564_p13 = por %p563_p12, %p562_p11 }
  0x1b   :  { %p565_p0 = pnand %p564_p13, %p558_p10 }
  0x1d   :  { %568 = shalt.err (!%p565_p0)
}
  0x1e   :  { %s575_s30 = smov [#allocation7]  }
  0x1f   :  { %44 = dma.vmem_to_smem %s42_s28, 16, %s575_s30, [#allocation6]  }
  0x20   :  { %569 = dma.done.wait [#allocation4], 16  }
  0x21   :  { %570 = vsyncadd [#allocation4], 4294967280 }
  0x22   :  { %571 = dma.done.wait [#allocation6], 32  }
  0x23   :  { %572 = vsyncadd [#allocation6], 4294967264 }
  0x24   :  { %56 = sfence }
  0x25   :  { %s57_s6 = sld [smem:[#allocation3]]  ;;  %s471_s7 = sld [smem:[#allocation3 + $0x1]]  ;;  %v626_v0 = vld [vmem:[%s991_s0] sm:$0xff]  ;;  %v631_v1 = vld [vmem:[%s991_s0 + $0x8] sm:$0xff]  ;;  %v636_v2 = vld [vmem:[%s991_s0 + $0x18] sm:$0xff]  ;;  %v137_v4 = vstv %s995_s4 }
  0x26   :  { %s472_s8 = sld [smem:[#allocation3 + $0x2]]  ;;  %s473_s9 = sld [smem:[#allocation3 + $0x3]]  ;;  %v641_v3 = vld [vmem:[%s991_s0 + $0x20] sm:$0xff]  ;;  %v649_v5 = vld [vmem:[%s991_s0 + $0x10] sm:$0xff]  ;;  %v654_v6 = vld [vmem:[%s991_s0 + $0x28] sm:$0xff] }
  0x27   :  { %s615_s3 = sld [smem:[#allocation3 + $0x4]]  ;;  %s617_s10 = sld [smem:[#allocation3 + $0x5]]  ;;  %v659_v9 = vld [vmem:[%s991_s0 + $0x30] sm:$0xff]  ;;  %v664_v10 = vld [vmem:[%s991_s0 + $0x38] sm:$0xff]  ;;  %v688_v18 = vld [vmem:[%s991_s0 + $0x40] sm:$0xff] }
  0x28   :  { %s619_s11 = sld [smem:[#allocation3 + $0x6]]  ;;  %s621_s12 = sld [smem:[#allocation3 + $0x7]] }
  0x29   :  { %s667_s29 = sld [smem:[#allocation3 + $0x8]]  ;;  %s669_s30 = sld [smem:[#allocation3 + $0x9]] }
  0x2a   :  { %s712_s0 = sld [smem:[#allocation5]]  ;;  %s714_s13 = sld [smem:[#allocation5 + $0x1]] }
  0x2b   :  { %v138_v7 = vstv %s57_s6  ;;  %v142_v8 = vstv %s471_s7  ;;  %s681_s6 = sld [smem:[#allocation3 + $0xa]]  ;;  %s683_s7 = sld [smem:[#allocation3 + $0xb]] }
  0x2c   :  { %v139_v11 = vmul.f32 %v138_v7, %v626_v0  ;;  %v145_v12 = vstv %s472_s8  ;;  %v148_v13 = vstv %s473_s9  ;;  %v672_v14 = vmul.f32 %v631_v1, %v142_v8  ;;  %s758_s14 = sld [smem:[#allocation7 + $0x4]]  ;;  %s773_s15 = sld [smem:[#allocation7 + $0x5]] }
  0x2d   :  { %v675_v15 = vmul.f32 %v636_v2, %v145_v12  ;;  %v678_v16 = vmul.f32 %v641_v3, %v148_v13  ;;  %v155_v17 = vmul.f32 %v631_v1, %v138_v7  ;;  %v157_v19 = vmul.f32 %v649_v5, %v142_v8  ;;  %s791_s16 = sld [smem:[#allocation7 + $0x6]]  ;;  %s798_s17 = sld [smem:[#allocation5 + $0x2]] }
  0x2e   :  { %v692_v20 = vmul.f32 %v641_v3, %v145_v12  ;;  %v695_v21 = vmul.f32 %v654_v6, %v148_v13  ;;  %v167_v22 = vmul.f32 %v636_v2, %v138_v7  ;;  %v169_v23 = vmul.f32 %v641_v3, %v142_v8  ;;  %s800_s18 = sld [smem:[#allocation7 + $0x7]]  ;;  %s805_s19 = sld [smem:[#allocation7 + $0x8]] }
  0x2f   :  { %v700_v24 = vmul.f32 %v659_v9, %v145_v12  ;;  %v703_v25 = vmul.f32 %v664_v10, %v148_v13  ;;  %v179_v26 = vmul.f32 %v641_v3, %v138_v7  ;;  %v181_v27 = vmul.f32 %v654_v6, %v142_v8  ;;  %s813_s20 = sld [smem:[#allocation7 + $0x9]]  ;;  %s819_s21 = sld [smem:[#allocation7 + $0xa]] }
  0x30   :  { %v708_v28 = vmul.f32 %v664_v10, %v145_v12  ;;  %v191_v29 = vstv %s615_s3  ;;  %v195_v30 = vstv %s617_s10  ;;  %v717_v31 = vmul.f32 %v688_v18, %v148_v13  ;;  %s734_s3 = sld [smem:[#allocation7]]  ;;  %s736_s10 = sld [smem:[#allocation7 + $0x1]] }
  0x31   :  { %v192_v32 = vmul.f32 %v191_v29, %v626_v0  ;;  %v198_v33 = vstv %s619_s11  ;;  %v201_v34 = vstv %s621_s12  ;;  %v196_v35 = vmul.f32 %v631_v1, %v195_v30  ;;  %s744_s11 = sld [smem:[#allocation7 + $0x2]]  ;;  %s746_s12 = sld [smem:[#allocation7 + $0x3]] }
  0x32   :  { %v199_v36 = vmul.f32 %v636_v2, %v198_v33  ;;  %v725_v37 = vmul.f32 %v641_v3, %v201_v34  ;;  %v208_v38 = vmul.f32 %v631_v1, %v191_v29  ;;  %v210_v39 = vmul.f32 %v649_v5, %v195_v30  ;;  %s828_s24 = sld [smem:[#allocation3 + $0xc]]  ;;  %s834_s4 = sld [smem:[#allocation5 + $0x3]] }
  0x33   :  { %v212_v40 = vmul.f32 %v641_v3, %v198_v33  ;;  %v731_v41 = vmul.f32 %v654_v6, %v201_v34  ;;  %v220_v42 = vmul.f32 %v636_v2, %v191_v29  ;;  %v222_v43 = vmul.f32 %v641_v3, %v195_v30  ;;  %s840_s25 = sld [smem:[#allocation3 + $0xd]]  ;;  %s850_s26 = sld [smem:[#allocation3 + $0xe]] }
  0x34   :  { %v224_v44 = vmul.f32 %v659_v9, %v198_v33  ;;  %v741_v45 = vmul.f32 %v664_v10, %v201_v34  ;;  %v232_v46 = vmul.f32 %v641_v3, %v191_v29  ;;  %v234_v47 = vmul.f32 %v654_v6, %v195_v30  ;;  %s852_s2 = sld [smem:[#allocation3 + $0xf]]  ;;  %s863_s1 = sld [smem:[#allocation7 + $0xb]] }
  0x35   :  { %v750_v48 = vmul.f32 %v664_v10, %v198_v33  ;;  %v753_v49 = vstv %s667_s29  ;;  %v756_v50 = vstv %s669_s30  ;;  %v761_v51 = vmul.f32 %v688_v18, %v201_v34  ;;  %s871_s27 = sld [smem:[#allocation7 + $0xc]]  ;;  %s876_s28 = sld [smem:[#allocation7 + $0xd]] }
  0x36   :  { %v765_v52 = vmul.f32 %v753_v49, %v626_v0  ;;  %v768_v53 = vstv %s681_s6  ;;  %v771_v54 = vstv %s683_s7  ;;  %v140_v55 = vstv %s712_s0  ;;  %s882_s29 = sld [smem:[#allocation7 + $0xe]]  ;;  %s885_s30 = sld [smem:[#allocation3 + $0x10]] }
  0x37   :  { %v193_v56 = vstv %s714_s13  ;;  %v779_v57 = vmul.f32 %v631_v1, %v756_v50  ;;  %v783_v58 = vmul.f32 %v636_v2, %v768_v53  ;;  %v141_v59 = vadd.f32 %v140_v55, %v139_v11  ;;  %s890_s6 = sld [smem:[#allocation5 + $0x4]]  ;;  %s893_s7 = sld [smem:[#allocation3 + $0x11]] }
  0x38   :  { %v156_v60 = vadd.f32 %v155_v17, %v140_v55  ;;  %v168_v61 = vadd.f32 %v167_v22, %v140_v55  ;;  %v180_v62 = vadd.f32 %v179_v26, %v140_v55  ;;  %v194_v63 = vadd.f32 %v193_v56, %v192_v32  ;;  %s895_s8 = sld [smem:[#allocation3 + $0x12]]  ;;  %s901_s9 = sld [smem:[#allocation3 + $0x13]] }
  0x39   :  { %v209_v7 = vadd.f32 %v208_v38, %v193_v56  ;;  %v221_v8 = vadd.f32 %v220_v42, %v193_v56  ;;  %v787_v12 = vmul.f32 %v641_v3, %v771_v54  ;;  %v144_v13 = vadd.f32 %v672_v14, %v141_v59  ;;  %s903_s0 = sld [smem:[#allocation7 + $0xf]]  ;;  %s909_s13 = sld [smem:[#allocation7 + $0x10]] }
  0x3a   :  { %v152_v29 = vstv %s734_s3  ;;  %v158_v30 = vadd.f32 %v157_v19, %v156_v60  ;;  %v233_v33 = vadd.f32 %v232_v46, %v193_v56  ;;  %v164_v11 = vstv %s736_s10  ;;  %s917_s3 = sld [smem:[#allocation7 + $0x11]]  ;;  %s925_s10 = sld [smem:[#allocation7 + $0x12]] }
  0x3b   :  { %v170_v17 = vadd.f32 %v169_v23, %v168_v61  ;;  %v176_v22 = vstv %s744_s11  ;;  %v182_v26 = vadd.f32 %v181_v27, %v180_v62  ;;  %v147_v32 = vadd.f32 %v675_v15, %v144_v13  ;;  %s929_s11 = sld [smem:[#allocation3 + $0x14]] }
  0x3c   :  { %v160_v34 = vadd.f32 %v692_v20, %v158_v30  ;;  %v188_v38 = vstv %s746_s12  ;;  %v197_v42 = vadd.f32 %v196_v35, %v194_v63  ;;  %v205_v46 = vstv %s758_s14  ;;  %s933_s12 = sld [smem:[#allocation3 + $0x15]] }
  0x3d   :  { %v172_v14 = vadd.f32 %v700_v24, %v170_v17  ;;  %v184_v19 = vadd.f32 %v708_v28, %v182_v26  ;;  %v211_v55 = vadd.f32 %v210_v39, %v209_v7  ;;  %v150_v23 = vadd.f32 %v678_v16, %v147_v32  ;;  %s935_s14 = sld [smem:[#allocation5 + $0x5]] }
  0x3e   :  { %v162_v15 = vadd.f32 %v695_v21, %v160_v34  ;;  %v200_v20 = vadd.f32 %v199_v36, %v197_v42  ;;  %v223_v27 = vadd.f32 %v222_v43, %v221_v8  ;;  %v217_v60 = vstv %s773_s15  ;;  %s940_s15 = sld [smem:[#allocation3 + $0x16]] }
  0x3f   :  { %v174_v35 = vadd.f32 %v703_v25, %v172_v14  ;;  %v186_v56 = vadd.f32 %v717_v31, %v184_v19  ;;  %v213_v59 = vadd.f32 %v212_v40, %v211_v55  ;;  %v151_v24 = vmax.f32 %v150_v23, 0.0 }
  0x40   :  { %v163_v61 = vmax.f32 %v162_v15, 0.0  ;;  %v203_v28 = vadd.f32 %v725_v37, %v200_v20  ;;  %v225_v39 = vadd.f32 %v224_v44, %v223_v27  ;;  %v235_v36 = vadd.f32 %v234_v47, %v233_v33 }
  0x41   :  { %v175_v62 = vmax.f32 %v174_v35, 0.0  ;;  %v187_v16 = vmax.f32 %v186_v56, 0.0  ;;  %v215_v21 = vadd.f32 %v731_v41, %v213_v59  ;;  %v153_v43 = vmul.f32 %v152_v29, %v151_v24 }
  0x42   :  { %v165_v25 = vmul.f32 %v164_v11, %v163_v61  ;;  %v204_v31 = vmax.f32 %v203_v28, 0.0  ;;  %v227_v40 = vadd.f32 %v741_v45, %v225_v39  ;;  %v229_v8 = vstv %s791_s16  ;;  %s942_s16 = sld [smem:[#allocation3 + $0x17]] }
  0x43   :  { %v177_v63 = vmul.f32 %v176_v22, %v175_v62  ;;  %v216_v7 = vmax.f32 %v215_v21, 0.0  ;;  %v237_v37 = vadd.f32 %v750_v48, %v235_v36  ;;  %v154_v41 = vadd.f32 %v153_v43, %v137_v4 }
  0x44   :  { %v189_v44 = vmul.f32 %v188_v38, %v187_v16  ;;  %v206_v47 = vmul.f32 %v205_v46, %v204_v31  ;;  %v228_v13 = vmax.f32 %v227_v40, 0.0  ;;  %v241_v45 = vstv %s800_s18  ;;  %s961_s18 = sld [smem:[#allocation7 + $0x14]] }
  0x45   :  { %v218_v29 = vmul.f32 %v217_v60, %v216_v7  ;;  %v239_v30 = vadd.f32 %v761_v51, %v237_v37  ;;  %v246_v33 = vstv %s798_s17  ;;  %v166_v11 = vadd.f32 %v165_v25, %v154_v41  ;;  %s952_s17 = sld [smem:[#allocation7 + $0x13]] }
  0x46   :  { %v247_v48 = vadd.f32 %v246_v33, %v765_v52  ;;  %v258_v17 = vstv %s805_s19  ;;  %v261_v22 = vmul.f32 %v631_v1, %v753_v49  ;;  %v230_v4 = vmul.f32 %v229_v8, %v228_v13  ;;  %s969_s19 = sld [smem:[#allocation7 + $0x15]] }
  0x47   :  { %v240_v26 = vmax.f32 %v239_v30, 0.0  ;;  %v263_v32 = vmul.f32 %v649_v5, %v756_v50  ;;  %v265_v51 = vmul.f32 %v641_v3, %v768_v53  ;;  %v178_v34 = vadd.f32 %v177_v63, %v166_v11 }
  0x48   :  { %v250_v38 = vadd.f32 %v779_v57, %v247_v48  ;;  %v262_v52 = vadd.f32 %v261_v22, %v246_v33  ;;  %v267_v42 = vmul.f32 %v654_v6, %v771_v54  ;;  %v270_v19 = vstv %s813_s20  ;;  %s975_s20 = sld [smem:[#allocation7 + $0x16]] }
  0x49   :  { %v242_v14 = vmul.f32 %v241_v45, %v240_v26  ;;  %v273_v46 = vmul.f32 %v636_v2, %v753_v49  ;;  %v275_v55 = vmul.f32 %v641_v3, %v756_v50  ;;  %v190_v23 = vadd.f32 %v189_v44, %v178_v34 }
  0x4a   :  { %v253_v57 = vadd.f32 %v783_v58, %v250_v38  ;;  %v264_v15 = vadd.f32 %v263_v32, %v262_v52  ;;  %v277_v20 = vmul.f32 %v659_v9, %v768_v53  ;;  %v279_v35 = vmul.f32 %v664_v10, %v771_v54 }
  0x4b   :  { %v274_v27 = vadd.f32 %v273_v46, %v246_v33  ;;  %v285_v56 = vmul.f32 %v641_v3, %v753_v49  ;;  %v287_v59 = vmul.f32 %v654_v6, %v756_v50  ;;  %v207_v60 = vadd.f32 %v206_v47, %v190_v23 }
  0x4c   :  { %v256_v58 = vadd.f32 %v787_v12, %v253_v57  ;;  %v266_v24 = vadd.f32 %v265_v51, %v264_v15  ;;  %v282_v61 = vstv %s819_s21  ;;  %v289_v62 = vmul.f32 %v664_v10, %v768_v53  ;;  %s521_s21 = sld [smem:[#allocation7 + $0x17]] }
  0x4d   :  { %v276_v28 = vadd.f32 %v275_v55, %v274_v27  ;;  %v286_v39 = vadd.f32 %v285_v56, %v246_v33  ;;  %v291_v49 = vmul.f32 %v688_v18, %v771_v54  ;;  %v219_v50 = vadd.f32 %v218_v29, %v207_v60 }
  0x4e   :  { %v257_v16 = vmax.f32 %v256_v58, 0.0  ;;  %v268_v21 = vadd.f32 %v267_v42, %v266_v24  ;;  %v297_v36 = vstv %s828_s24  ;;  %v299_v31 = vstv %s834_s4 }
  0x4f   :  { %v278_v43 = vadd.f32 %v277_v20, %v276_v28  ;;  %v288_v12 = vadd.f32 %v287_v59, %v286_v39  ;;  %v298_v25 = vmul.f32 %v297_v36, %v626_v0  ;;  %v231_v40 = vadd.f32 %v230_v4, %v219_v50 }
  0x50   :  { %v259_v53 = vmul.f32 %v258_v17, %v257_v16  ;;  %v269_v63 = vmax.f32 %v268_v21, 0.0  ;;  %v301_v7 = vstv %s840_s25  ;;  %v304_v13 = vstv %s850_s26 }
  0x51   :  { %v280_v54 = vadd.f32 %v279_v35, %v278_v43  ;;  %v290_v8 = vadd.f32 %v289_v62, %v288_v12  ;;  %v300_v37 = vadd.f32 %v299_v31, %v298_v25  ;;  %v302_v41 = vmul.f32 %v631_v1, %v301_v7 }
  0x52   :  { %v243_v44 = vadd.f32 %v242_v14, %v231_v40  ;;  %v271_v47 = vmul.f32 %v270_v19, %v269_v63  ;;  %v307_v29 = vstv %s852_s2  ;;  %v305_v11 = vmul.f32 %v636_v2, %v304_v13 }
  0x53   :  { %v281_v30 = vmax.f32 %v280_v54, 0.0  ;;  %v292_v45 = vadd.f32 %v291_v49, %v290_v8  ;;  %v303_v33 = vadd.f32 %v302_v41, %v300_v37  ;;  %v294_v17 = vstv %s863_s1 }
  0x54   :  { %v260_v48 = vadd.f32 %v259_v53, %v243_v44  ;;  %v308_v22 = vmul.f32 %v641_v3, %v307_v29  ;;  %v314_v4 = vmul.f32 %v631_v1, %v297_v36  ;;  %v316_v34 = vmul.f32 %v649_v5, %v301_v7 }
  0x55   :  { %v283_v26 = vmul.f32 %v282_v61, %v281_v30  ;;  %v293_v32 = vmax.f32 %v292_v45, 0.0  ;;  %v306_v51 = vadd.f32 %v305_v11, %v303_v33  ;;  %v311_v52 = vstv %s871_s27 }
  0x56   :  { %v272_v38 = vadd.f32 %v271_v47, %v260_v48  ;;  %v315_v42 = vadd.f32 %v314_v4, %v299_v31  ;;  %v318_v14 = vmul.f32 %v641_v3, %v304_v13  ;;  %v320_v55 = vmul.f32 %v654_v6, %v307_v29 }
  0x57   :  { %v295_v19 = vmul.f32 %v294_v17, %v293_v32  ;;  %v309_v46 = vadd.f32 %v308_v22, %v306_v51  ;;  %v326_v23 = vmul.f32 %v636_v2, %v297_v36  ;;  %v323_v20 = vstv %s876_s28 }
  0x58   :  { %v284_v57 = vadd.f32 %v283_v26, %v272_v38  ;;  %v317_v15 = vadd.f32 %v316_v34, %v315_v42  ;;  %v328_v27 = vmul.f32 %v641_v3, %v301_v7  ;;  %v330_v59 = vmul.f32 %v659_v9, %v304_v13 }
  0x59   :  { %v310_v35 = vmax.f32 %v309_v46, 0.0  ;;  %v327_v56 = vadd.f32 %v326_v23, %v299_v31  ;;  %v332_v60 = vmul.f32 %v664_v10, %v307_v29  ;;  %v338_v61 = vmul.f32 %v641_v3, %v297_v36 }
  0x5a   :  { %v296_v58 = vadd.f32 %v295_v19, %v284_v57  ;;  %v319_v24 = vadd.f32 %v318_v14, %v317_v15  ;;  %v340_v28 = vmul.f32 %v654_v6, %v301_v7  ;;  %v335_v49 = vstv %s882_s29 }
  0x5b   :  { %v312_v39 = vmul.f32 %v311_v52, %v310_v35  ;;  %v329_v62 = vadd.f32 %v328_v27, %v327_v56  ;;  %v342_v50 = vmul.f32 %v664_v10, %v304_v13  ;;  %v339_v21 = vadd.f32 %v338_v61, %v299_v31 }
  0x5c   :  { %v321_v16 = vadd.f32 %v320_v55, %v319_v24  ;;  %v344_v43 = vmul.f32 %v688_v18, %v307_v29  ;;  %v350_v12 = vstv %s885_s30  ;;  %v352_v53 = vstv %s890_s6 }
  0x5d   :  { %v313_v25 = vadd.f32 %v312_v39, %v296_v58  ;;  %v331_v36 = vadd.f32 %v330_v59, %v329_v62  ;;  %v351_v40 = vmul.f32 %v350_v12, %v626_v0  ;;  %v341_v7 = vadd.f32 %v340_v28, %v339_v21 }
  0x5e   :  { %v322_v63 = vmax.f32 %v321_v16, 0.0  ;;  %v354_v54 = vstv %s893_s7  ;;  %v357_v8 = vstv %s895_s8  ;;  %v347_v29 = vstv %s903_s0 }
  0x5f   :  { %v333_v37 = vadd.f32 %v332_v60, %v331_v36  ;;  %v353_v41 = vadd.f32 %v352_v53, %v351_v40  ;;  %v355_v31 = vmul.f32 %v631_v1, %v354_v54  ;;  %v358_v44 = vmul.f32 %v636_v2, %v357_v8 }
  0x60   :  { %v324_v47 = vmul.f32 %v323_v20, %v322_v63  ;;  %v343_v13 = vadd.f32 %v342_v50, %v341_v7  ;;  %v360_v30 = vstv %s901_s9  ;;  %v367_v48 = vmul.f32 %v631_v1, %v350_v12 }
  0x61   :  { %v334_v45 = vmax.f32 %v333_v37, 0.0  ;;  %v356_v33 = vadd.f32 %v355_v31, %v353_v41  ;;  %v361_v11 = vmul.f32 %v641_v3, %v360_v30  ;;  %v364_v4 = vstv %s909_s13 }
  0x62   :  { %v325_v17 = vadd.f32 %v324_v47, %v313_v25  ;;  %v345_v22 = vadd.f32 %v344_v43, %v343_v13  ;;  %v369_v26 = vmul.f32 %v649_v5, %v354_v54  ;;  %v368_v34 = vadd.f32 %v367_v48, %v352_v53 }
  0x63   :  { %v336_v32 = vmul.f32 %v335_v49, %v334_v45  ;;  %v359_v51 = vadd.f32 %v358_v44, %v356_v33  ;;  %v371_v38 = vmul.f32 %v641_v3, %v357_v8  ;;  %v373_v42 = vmul.f32 %v654_v6, %v360_v30 }
  0x64   :  { %v346_v52 = vmax.f32 %v345_v22, 0.0  ;;  %v379_v14 = vmul.f32 %v636_v2, %v350_v12  ;;  %v381_v19 = vmul.f32 %v641_v3, %v354_v54  ;;  %v370_v23 = vadd.f32 %v369_v26, %v368_v34 }
  0x65   :  { %v337_v46 = vadd.f32 %v336_v32, %v325_v17  ;;  %v362_v55 = vadd.f32 %v361_v11, %v359_v51  ;;  %v376_v57 = vstv %s917_s3  ;;  %v383_v27 = vmul.f32 %v659_v9, %v357_v8 }
  0x66   :  { %v348_v15 = vmul.f32 %v347_v29, %v346_v52  ;;  %v380_v20 = vadd.f32 %v379_v14, %v352_v53  ;;  %v385_v35 = vmul.f32 %v664_v10, %v360_v30  ;;  %v372_v59 = vadd.f32 %v371_v38, %v370_v23 }
  0x67   :  { %v363_v56 = vmax.f32 %v362_v55, 0.0  ;;  %v391_v60 = vmul.f32 %v641_v3, %v350_v12  ;;  %v393_v58 = vmul.f32 %v654_v6, %v354_v54  ;;  %v388_v28 = vstv %s925_s10 }
  0x68   :  { %v349_v24 = vadd.f32 %v348_v15, %v337_v46  ;;  %v382_v61 = vadd.f32 %v381_v19, %v380_v20  ;;  %v395_v39 = vmul.f32 %v664_v10, %v357_v8  ;;  %v374_v49 = vadd.f32 %v373_v42, %v372_v59 }
  0x69   :  { %v365_v62 = vmul.f32 %v364_v4, %v363_v56  ;;  %v392_v50 = vadd.f32 %v391_v60, %v352_v53  ;;  %v397_v16 = vmul.f32 %v688_v18, %v360_v30  ;;  %v403_v43 = vstv %s929_s11 }
  0x6a   :  { %v384_v21 = vadd.f32 %v383_v27, %v382_v61  ;;  %v405_v25 = vstv %s935_s14  ;;  %v407_v12 = vstv %s933_s12  ;;  %v375_v40 = vmax.f32 %v374_v49, 0.0 }
  0x6b   :  { %v366_v36 = vadd.f32 %v365_v62, %v349_v24  ;;  %v394_v63 = vadd.f32 %v393_v58, %v392_v50  ;;  %v404_v7 = vmul.f32 %v403_v43, %v626_v0  ;;  %v408_v8 = vmul.f32 %v631_v1, %v407_v12 }
  0x6c   :  { %v386_v54 = vadd.f32 %v385_v35, %v384_v21  ;;  %v410_v37 = vstv %s940_s15  ;;  %v413_v41 = vstv %s942_s16  ;;  %v377_v53 = vmul.f32 %v376_v57, %v375_v40 }
  0x6d   :  { %v396_v31 = vadd.f32 %v395_v39, %v394_v63  ;;  %v406_v44 = vadd.f32 %v405_v25, %v404_v7  ;;  %v411_v47 = vmul.f32 %v636_v2, %v410_v37  ;;  %v414_v29 = vmul.f32 %v641_v3, %v413_v41 }
  0x6e   :  { %v387_v13 = vmax.f32 %v386_v54, 0.0  ;;  %v420_v30 = vmul.f32 %v631_v1, %v403_v43  ;;  %v378_v0 = vadd.f32 %v377_v53, %v366_v36  ;;  %v422_v11 = vmul.f32 %v649_v5, %v407_v12 }
  0x6f   :  { %v398_v45 = vadd.f32 %v397_v16, %v396_v31  ;;  %v409_v33 = vadd.f32 %v408_v8, %v406_v44  ;;  %v400_v17 = vstv %s952_s17  ;;  %v424_v4 = vmul.f32 %v641_v3, %v410_v37 }
  0x70   :  { %v389_v48 = vmul.f32 %v388_v28, %v387_v13  ;;  %v421_v22 = vadd.f32 %v420_v30, %v405_v25  ;;  %v432_v51 = vmul.f32 %v636_v2, %v403_v43  ;;  %v426_v38 = vmul.f32 %v654_v6, %v413_v41 }
  0x71   :  { %v399_v26 = vmax.f32 %v398_v45, 0.0  ;;  %v412_v32 = vadd.f32 %v411_v47, %v409_v33  ;;  %v434_v52 = vmul.f32 %v641_v3, %v407_v12  ;;  %v436_v19 = vmul.f32 %v659_v9, %v410_v37 }
  0x72   :  { %v390_v1 = vadd.f32 %v389_v48, %v378_v0  ;;  %v423_v34 = vadd.f32 %v422_v11, %v421_v22  ;;  %v433_v14 = vadd.f32 %v432_v51, %v405_v25  ;;  %v417_v46 = vstv %s961_s18 }
  0x73   :  { %v401_v42 = vmul.f32 %v400_v17, %v399_v26  ;;  %v415_v5 = vadd.f32 %v414_v29, %v412_v32  ;;  %v444_v23 = vmul.f32 %v641_v3, %v403_v43  ;;  %v446_v2 = vmul.f32 %v654_v6, %v407_v12 }
  0x74   :  { %v425_v55 = vadd.f32 %v424_v4, %v423_v34  ;;  %v435_v20 = vadd.f32 %v434_v52, %v433_v14  ;;  %v438_v27 = vmul.f32 %v664_v10, %v413_v41  ;;  %v448_v59 = vmul.f32 %v664_v10, %v410_v37 }
  0x75   :  { %v402_v57 = vadd.f32 %v401_v42, %v390_v1  ;;  %v416_v15 = vmax.f32 %v415_v5, 0.0  ;;  %v445_v56 = vadd.f32 %v444_v23, %v405_v25  ;;  %v429_v58 = vstv %s969_s19 }
  0x76   :  { %v427_v35 = vadd.f32 %v426_v38, %v425_v55  ;;  %v437_v9 = vadd.f32 %v436_v19, %v435_v20  ;;  %v450_v3 = vmul.f32 %v688_v18, %v413_v41  ;;  %v441_v62 = vstv %s975_s20 }
  0x77   :  { %v418_v60 = vmul.f32 %v417_v46, %v416_v15  ;;  %v447_v61 = vadd.f32 %v446_v2, %v445_v56  ;;  %v453_v12 = vstv %s521_s21 }
  0x78   :  { %v428_v24 = vmax.f32 %v427_v35, 0.0  ;;  %v439_v6 = vadd.f32 %v438_v27, %v437_v9 }
  0x79   :  { %v419_v28 = vadd.f32 %v418_v60, %v402_v57  ;;  %v449_v49 = vadd.f32 %v448_v59, %v447_v61 }
  0x7a   :  { %v430_v39 = vmul.f32 %v429_v58, %v428_v24  ;;  %v440_v50 = vmax.f32 %v439_v6, 0.0 }
  0x7b   :  { %v451_v21 = vadd.f32 %v450_v3, %v449_v49 }
  0x7c   :  { %v431_v16 = vadd.f32 %v430_v39, %v419_v28  ;;  %v442_v43 = vmul.f32 %v441_v62, %v440_v50 }
  0x7d   :  { %v452_v25 = vmax.f32 %v451_v21, 0.0 }
  0x7e   :  { %v443_v36 = vadd.f32 %v442_v43, %v431_v16 }
  0x7f   :  { %v454_v10 = vmul.f32 %v453_v12, %v452_v25 }
  0x81   :  { %v455_v40 = vadd.f32 %v454_v10, %v443_v36 }
  0x83   :  { %456 = vst [vmem:[%s996_s5] sm:$0xff] %v455_v40 }
  0x84   :  { %461 = vsyncpa [#allocation4], 1 }
  0x85   :  { %462 = vsyncpa [#allocation6], 1 }

</bundles_post_ra>
